<compile_context>
chip_gen: v7x
topology: tpu7x:2x2x1
jax: 0.10.0
libtpu: 0.0.40
codegen_flags: <defaults>
</compile_context>

<pallas_src>
import jax
import jax.numpy as jnp
from jax.experimental import pallas as pl
from jax.experimental.pallas import tpu as pltpu


def _round_up(x, m):
    return (x + m - 1) // m * m


def fasttext_kernel(ids_uni_ref, ids_bi_ref, ids_tri_ref,     # (TB*S, 1) int32 VMEM blocks
                    emb_uni_ref, emb_bi_ref, emb_tri_ref,     # (Vp, E) VMEM-resident tables
                    w1_ref, b1_ref, w2_ref, b2_ref,           # padded, VMEM-resident weights
                    out_ref):                                 # (TB, Cp) output tile
    tb = out_ref.shape[0]
    seq = ids_uni_ref.shape[0] // tb
    inv_s = 1.0 / seq

    def bag_sum(ids_ref, emb_ref):
        vp = emb_ref.shape[0]
        ids = ids_ref[...]                                              # (TB*S, 1) int32
        vocab = jax.lax.broadcasted_iota(jnp.int32, (tb * seq, vp), 1)  # lane-dense iota
        onehot = (ids == vocab).astype(jnp.float32)                     # (TB*S, Vp)
        counts = jnp.sum(onehot.reshape(tb, seq, vp), axis=1)           # (TB, Vp) exact ints
        # sum_s emb[ids[b, s]] as one MXU matmul over the (padded) vocab axis.
        return jnp.dot(counts, emb_ref[...].astype(jnp.float32),
                       preferred_element_type=jnp.float32)              # (TB, E)

    # cat([uni, bi, tri], -1).mean(dim=1)  -> (TB, 3E) features in f32.
    feats = jnp.concatenate(
        [bag_sum(ids_uni_ref, emb_uni_ref),
         bag_sum(ids_bi_ref, emb_bi_ref),
         bag_sum(ids_tri_ref, emb_tri_ref)], axis=-1) * inv_s

    # fc1 (fused single matmul over 3E) -> ReLU -> fc2.
    h = jnp.dot(feats, w1_ref[...], preferred_element_type=jnp.float32) + b1_ref[...]
    h = jnp.maximum(h, 0.0)
    out = jnp.dot(h, w2_ref[...], preferred_element_type=jnp.float32) + b2_ref[...]
    out_ref[...] = out.astype(out_ref.dtype)


def fasttext_forward(params, x, *, batch_tile=8):
    """x = (unigram_ids, bigram_ids, trigram_ids), each int of shape (B, S)."""
    x0, x1, x2 = x
    B, S = x0.shape
    Vu, E = params["emb_uni"].shape
    Vn = params["emb_bi"].shape[0]
    H = params["w1"].shape[0]          # PyTorch fc1.weight: (H, 3E)
    C = params["w2"].shape[0]          # PyTorch fc2.weight: (C, H)

    tb = batch_tile                    # multiple of 8 (sublanes)
    b_pad = _round_up(max(B, tb), tb)
    vu_p = _round_up(Vu, 128)          # lane-dense one-hot / counts dim
    vn_p = _round_up(Vn, 128)
    hp = _round_up(H, 128)             # lane-dense hidden dim
    cp = _round_up(C, 128)             # lane-dense class dim (unmasked stores)

    f32 = jnp.float32

    def prep_ids(ids):
        # Pad batch rows with id 0 (always in-bounds, sliced off below) and
        # flatten to (b_pad*S, 1) so each grid step grabs one tile's ids.
        ids = jnp.pad(ids.astype(jnp.int32), ((0, b_pad - B), (0, 0)))
        return ids.reshape(b_pad * S, 1)

    ids0, ids1, ids2 = prep_ids(x0), prep_ids(x1), prep_ids(x2)

    def pad_table(t, vp):
        t = t.astype(f32)
        return jnp.pad(t, ((0, vp - t.shape[0]), (0, 0)))   # zero rows: count=0 anyway

    emb_uni = pad_table(params["emb_uni"], vu_p)
    emb_bi = pad_table(params["emb_bi"], vn_p)
    emb_tri = pad_table(params["emb_tri"], vn_p)

    # fc1 weight (H, 3E) -> (3E, Hp) zero-padded; bias -> (1, Hp).
    w1_p = jnp.zeros((3 * E, hp), f32).at[:, :H].set(params["w1"].astype(f32).T)
    b1_p = jnp.zeros((1, hp), f32).at[:, :H].set(params["b1"].astype(f32))
    # fc2 weight (C, H) -> (Hp, Cp) zero-padded; bias -> (1, Cp).
    w2_p = jnp.zeros((hp, cp), f32).at[:H, :C].set(params["w2"].astype(f32).T)
    b2_p = jnp.zeros((1, cp), f32).at[:, :C].set(params["b2"].astype(f32))

    out_pad = pl.pallas_call(
        fasttext_kernel,
        out_shape=jax.ShapeDtypeStruct((b_pad, cp), f32),
        grid_spec=pltpu.PrefetchScalarGridSpec(
            num_scalar_prefetch=0,
            grid=(b_pad // tb,),
            in_specs=[
                pl.BlockSpec((tb * S, 1), lambda i: (i, 0)),      # ids per batch tile
                pl.BlockSpec((tb * S, 1), lambda i: (i, 0)),
                pl.BlockSpec((tb * S, 1), lambda i: (i, 0)),
                pl.BlockSpec((vu_p, E), lambda i: (0, 0)),        # VMEM-resident tables
                pl.BlockSpec((vn_p, E), lambda i: (0, 0)),
                pl.BlockSpec((vn_p, E), lambda i: (0, 0)),
                pl.BlockSpec((3 * E, hp), lambda i: (0, 0)),      # VMEM-resident weights
                pl.BlockSpec((1, hp), lambda i: (0, 0)),
                pl.BlockSpec((hp, cp), lambda i: (0, 0)),
                pl.BlockSpec((1, cp), lambda i: (0, 0)),
            ],
            out_specs=pl.BlockSpec((tb, cp), lambda i: (i, 0)),
        ),
        compiler_params=pltpu.CompilerParams(
            dimension_semantics=("parallel",),                    # batch tiles independent
            vmem_limit_bytes=32 * 1024 * 1024,
        ),
    )(ids0, ids1, ids2, emb_uni, emb_bi, emb_tri, w1_p, b1_p, w2_p, b2_p)

    return out_pad[:B, :C]


def init_params(key, n_vocab, ngram_vocab, emb_dim, hidden, n_classes):
    k = jax.random.split(key, 7)
    emb_uni = 0.02 * jax.random.normal(k[0], (n_vocab, emb_dim), jnp.float32)
    # padding_idx = n_vocab - 1 -> zero row (matches nn.Embedding padding_idx init)
    emb_uni = emb_uni.at[n_vocab - 1].set(0.0)
    emb_bi = 0.02 * jax.random.normal(k[1], (ngram_vocab, emb_dim), jnp.float32)
    emb_tri = 0.02 * jax.random.normal(k[2], (ngram_vocab, emb_dim), jnp.float32)
    w1 = 0.05 * jax.random.normal(k[3], (hidden, emb_dim * 3), jnp.float32)   # PyTorch (out,in)
    b1 = 0.01 * jax.random.normal(k[4], (hidden,), jnp.float32)
    w2 = 0.05 * jax.random.normal(k[5], (n_classes, hidden), jnp.float32)
    b2 = 0.01 * jax.random.normal(k[6], (n_classes,), jnp.float32)
    return dict(emb_uni=emb_uni, emb_bi=emb_bi, emb_tri=emb_tri,
                w1=w1, b1=b1, w2=w2, b2=b2)


def reference_forward(params, x):
    """Pure-JAX reference mirroring the PyTorch forward (eval mode)."""
    x0, x1, x2 = x
    uni = jnp.take(params["emb_uni"], x0, axis=0)
    bi = jnp.take(params["emb_bi"], x1, axis=0)
    tri = jnp.take(params["emb_tri"], x2, axis=0)
    out = jnp.concatenate([uni, bi, tri], axis=-1).mean(axis=1)
    out = out @ params["w1"].T + params["b1"]
    out = jnp.maximum(out, 0.0)
    out = out @ params["w2"].T + params["b2"]
    return out


if __name__ == "__main__":
    # Small config: n_vocab=32, ngram_vocab=64, embedding_dim=32, hidden=32, classes=4
    B, S = 2, 8
    N_VOCAB, NGRAM_VOCAB, E, H, C = 32, 64, 32, 32, 4

    key = jax.random.PRNGKey(0)
    kp, k0, k1, k2 = jax.random.split(key, 4)
    params = init_params(kp, N_VOCAB, NGRAM_VOCAB, E, H, C)

    x0 = jax.random.randint(k0, (B, S), 0, N_VOCAB, dtype=jnp.int32)
    x1 = jax.random.randint(k1, (B, S), 0, NGRAM_VOCAB, dtype=jnp.int32)
    x2 = jax.random.randint(k2, (B, S), 0, NGRAM_VOCAB, dtype=jnp.int32)
    x = (x0, x1, x2)

    out = jax.block_until_ready(fasttext_forward(params, x))
    ref = jax.block_until_ready(reference_forward(params, x))

    assert out.shape == (B, C), out.shape
    assert jnp.allclose(out, ref, atol=1e-5, rtol=1e-5), (out, ref)

    print("KERNEL_OK")
</pallas_src>

<mosaic_0001>
module attributes {stable_mosaic.version = 11 : i64} {
  func.func @fasttext_kernel(%arg0: i32, %arg1: memref<64x1xi32, #tpu.memory_space<vmem>>, %arg2: memref<64x1xi32, #tpu.memory_space<vmem>>, %arg3: memref<64x1xi32, #tpu.memory_space<vmem>>, %arg4: memref<128x32xf32, #tpu.memory_space<vmem>>, %arg5: memref<128x32xf32, #tpu.memory_space<vmem>>, %arg6: memref<128x32xf32, #tpu.memory_space<vmem>>, %arg7: memref<96x128xf32, #tpu.memory_space<vmem>>, %arg8: memref<1x128xf32, #tpu.memory_space<vmem>>, %arg9: memref<128x128xf32, #tpu.memory_space<vmem>>, %arg10: memref<1x128xf32, #tpu.memory_space<vmem>>, %arg11: memref<8x128xf32, #tpu.memory_space<vmem>>) attributes {dimension_semantics = [#tpu.dimension_semantics<parallel>], iteration_bounds = array<i64: 1>, scalar_prefetch = 0 : i64, scratch_operands = 0 : i64, tpu.core_type = #tpu.core_type<tc>, window_params = [{transform_indices = @transform_0, window_bounds = array<i64: 64, 1>}, {transform_indices = @transform_1, window_bounds = array<i64: 64, 1>}, {transform_indices = @transform_2, window_bounds = array<i64: 64, 1>}, {pipeline_mode = #tpu.pipeline_mode<synchronous>, transform_indices = @transform_3, window_bounds = array<i64: 128, 32>}, {pipeline_mode = #tpu.pipeline_mode<synchronous>, transform_indices = @transform_4, window_bounds = array<i64: 128, 32>}, {pipeline_mode = #tpu.pipeline_mode<synchronous>, transform_indices = @transform_5, window_bounds = array<i64: 128, 32>}, {pipeline_mode = #tpu.pipeline_mode<synchronous>, transform_indices = @transform_6, window_bounds = array<i64: 96, 128>}, {pipeline_mode = #tpu.pipeline_mode<synchronous>, transform_indices = @transform_7, window_bounds = array<i64: 1, 128>}, {pipeline_mode = #tpu.pipeline_mode<synchronous>, transform_indices = @transform_8, window_bounds = array<i64: 128, 128>}, {pipeline_mode = #tpu.pipeline_mode<synchronous>, transform_indices = @transform_9, window_bounds = array<i64: 1, 128>}, {transform_indices = @transform_10, window_bounds = array<i64: 8, 128>}]} {
    %c0 = arith.constant 0 : index
    %c0_0 = arith.constant 0 : index
    %0 = vector.load %arg1[%c0, %c0_0] : memref<64x1xi32, #tpu.memory_space<vmem>>, vector<64x1xi32>
    %1 = tpu.iota {dimensions = array<i32: 1>} : vector<64x128xi32>
    %2 = vector.broadcast %0 : vector<64x1xi32> to vector<64x128xi32>
    %3 = arith.cmpi eq, %2, %1 : vector<64x128xi32>
    %4 = arith.extui %3 : vector<64x128xi1> to vector<64x128xi32>
    %5 = arith.sitofp %4 : vector<64x128xi32> to vector<64x128xf32>
    %6 = vector.shape_cast %5 : vector<64x128xf32> to vector<8x8x128xf32>
    %cst = arith.constant dense<0.000000e+00> : vector<8x128xf32>
    %7 = vector.multi_reduction <add>, %6, %cst [1] : vector<8x8x128xf32> to vector<8x128xf32>
    %c0_1 = arith.constant 0 : index
    %c0_2 = arith.constant 0 : index
    %8 = vector.load %arg4[%c0_1, %c0_2] : memref<128x32xf32, #tpu.memory_space<vmem>>, vector<128x32xf32>
    %cst_3 = arith.constant dense<0.000000e+00> : vector<8x32xf32>
    %9 = tpu.matmul %7, %8, %cst_3 {dimension_numbers = #tpu.dot_dimension_numbers<[1], [0], [0], [1], [0, 0, 1, 1], [], []>} : vector<8x128xf32>, vector<128x32xf32>, vector<8x32xf32> -> vector<8x32xf32>
    %c0_4 = arith.constant 0 : index
    %c0_5 = arith.constant 0 : index
    %10 = vector.load %arg2[%c0_4, %c0_5] : memref<64x1xi32, #tpu.memory_space<vmem>>, vector<64x1xi32>
    %11 = tpu.iota {dimensions = array<i32: 1>} : vector<64x128xi32>
    %12 = vector.broadcast %10 : vector<64x1xi32> to vector<64x128xi32>
    %13 = arith.cmpi eq, %12, %11 : vector<64x128xi32>
    %14 = arith.extui %13 : vector<64x128xi1> to vector<64x128xi32>
    %15 = arith.sitofp %14 : vector<64x128xi32> to vector<64x128xf32>
    %16 = vector.shape_cast %15 : vector<64x128xf32> to vector<8x8x128xf32>
    %cst_6 = arith.constant dense<0.000000e+00> : vector<8x128xf32>
    %17 = vector.multi_reduction <add>, %16, %cst_6 [1] : vector<8x8x128xf32> to vector<8x128xf32>
    %c0_7 = arith.constant 0 : index
    %c0_8 = arith.constant 0 : index
    %18 = vector.load %arg5[%c0_7, %c0_8] : memref<128x32xf32, #tpu.memory_space<vmem>>, vector<128x32xf32>
    %cst_9 = arith.constant dense<0.000000e+00> : vector<8x32xf32>
    %19 = tpu.matmul %17, %18, %cst_9 {dimension_numbers = #tpu.dot_dimension_numbers<[1], [0], [0], [1], [0, 0, 1, 1], [], []>} : vector<8x128xf32>, vector<128x32xf32>, vector<8x32xf32> -> vector<8x32xf32>
    %c0_10 = arith.constant 0 : index
    %c0_11 = arith.constant 0 : index
    %20 = vector.load %arg3[%c0_10, %c0_11] : memref<64x1xi32, #tpu.memory_space<vmem>>, vector<64x1xi32>
    %21 = tpu.iota {dimensions = array<i32: 1>} : vector<64x128xi32>
    %22 = vector.broadcast %20 : vector<64x1xi32> to vector<64x128xi32>
    %23 = arith.cmpi eq, %22, %21 : vector<64x128xi32>
    %24 = arith.extui %23 : vector<64x128xi1> to vector<64x128xi32>
    %25 = arith.sitofp %24 : vector<64x128xi32> to vector<64x128xf32>
    %26 = vector.shape_cast %25 : vector<64x128xf32> to vector<8x8x128xf32>
    %cst_12 = arith.constant dense<0.000000e+00> : vector<8x128xf32>
    %27 = vector.multi_reduction <add>, %26, %cst_12 [1] : vector<8x8x128xf32> to vector<8x128xf32>
    %c0_13 = arith.constant 0 : index
    %c0_14 = arith.constant 0 : index
    %28 = vector.load %arg6[%c0_13, %c0_14] : memref<128x32xf32, #tpu.memory_space<vmem>>, vector<128x32xf32>
    %cst_15 = arith.constant dense<0.000000e+00> : vector<8x32xf32>
    %29 = tpu.matmul %27, %28, %cst_15 {dimension_numbers = #tpu.dot_dimension_numbers<[1], [0], [0], [1], [0, 0, 1, 1], [], []>} : vector<8x128xf32>, vector<128x32xf32>, vector<8x32xf32> -> vector<8x32xf32>
    %30 = tpu.concatenate %9, %19, %29 in 1 : vector<8x32xf32>, vector<8x32xf32>, vector<8x32xf32> -> vector<8x96xf32>
    %cst_16 = arith.constant 1.250000e-01 : f32
    %31 = vector.broadcast %cst_16 : f32 to vector<8x96xf32>
    %32 = arith.mulf %30, %31 : vector<8x96xf32>
    %c0_17 = arith.constant 0 : index
    %c0_18 = arith.constant 0 : index
    %33 = vector.load %arg7[%c0_17, %c0_18] : memref<96x128xf32, #tpu.memory_space<vmem>>, vector<96x128xf32>
    %cst_19 = arith.constant dense<0.000000e+00> : vector<8x128xf32>
    %34 = tpu.matmul %32, %33, %cst_19 {dimension_numbers = #tpu.dot_dimension_numbers<[1], [0], [0], [1], [0, 0, 1, 1], [], []>} : vector<8x96xf32>, vector<96x128xf32>, vector<8x128xf32> -> vector<8x128xf32>
    %c0_20 = arith.constant 0 : index
    %c0_21 = arith.constant 0 : index
    %35 = vector.load %arg8[%c0_20, %c0_21] : memref<1x128xf32, #tpu.memory_space<vmem>>, vector<1x128xf32>
    %36 = vector.broadcast %35 : vector<1x128xf32> to vector<8x128xf32>
    %37 = arith.addf %34, %36 : vector<8x128xf32>
    %cst_22 = arith.constant 0.000000e+00 : f32
    %38 = vector.broadcast %cst_22 : f32 to vector<8x128xf32>
    %39 = arith.maximumf %37, %38 : vector<8x128xf32>
    %c0_23 = arith.constant 0 : index
    %c0_24 = arith.constant 0 : index
    %40 = vector.load %arg9[%c0_23, %c0_24] : memref<128x128xf32, #tpu.memory_space<vmem>>, vector<128x128xf32>
    %cst_25 = arith.constant dense<0.000000e+00> : vector<8x128xf32>
    %41 = tpu.matmul %39, %40, %cst_25 {dimension_numbers = #tpu.dot_dimension_numbers<[1], [0], [0], [1], [0, 0, 1, 1], [], []>} : vector<8x128xf32>, vector<128x128xf32>, vector<8x128xf32> -> vector<8x128xf32>
    %c0_26 = arith.constant 0 : index
    %c0_27 = arith.constant 0 : index
    %42 = vector.load %arg10[%c0_26, %c0_27] : memref<1x128xf32, #tpu.memory_space<vmem>>, vector<1x128xf32>
    %43 = vector.broadcast %42 : vector<1x128xf32> to vector<8x128xf32>
    %44 = arith.addf %41, %43 : vector<8x128xf32>
    %c0_28 = arith.constant 0 : index
    %c0_29 = arith.constant 0 : index
    %45 = vector.load %arg11[%c0_28, %c0_29] : memref<8x128xf32, #tpu.memory_space<vmem>>, vector<8x128xf32>
    tpu.vector_store %arg11[%c0_28, %c0_29], %44 {strides = array<i32>} : memref<8x128xf32, #tpu.memory_space<vmem>>, vector<8x128xf32>,
    return
  }
  func.func @transform_0(%arg0: i32) -> (i32, i32) {
    %c0_i32 = arith.constant 0 : i32
    %c0_i32_0 = arith.constant 0 : i32
    return %arg0, %c0_i32 : i32, i32
  }
  func.func @transform_1(%arg0: i32) -> (i32, i32) {
    %c0_i32 = arith.constant 0 : i32
    %c0_i32_0 = arith.constant 0 : i32
    return %arg0, %c0_i32 : i32, i32
  }
  func.func @transform_2(%arg0: i32) -> (i32, i32) {
    %c0_i32 = arith.constant 0 : i32
    %c0_i32_0 = arith.constant 0 : i32
    return %arg0, %c0_i32 : i32, i32
  }
  func.func @transform_3(%arg0: i32) -> (i32, i32) {
    %c0_i32 = arith.constant 0 : i32
    %c0_i32_0 = arith.constant 0 : i32
    %c0_i32_1 = arith.constant 0 : i32
    return %c0_i32, %c0_i32_0 : i32, i32
  }
  func.func @transform_4(%arg0: i32) -> (i32, i32) {
    %c0_i32 = arith.constant 0 : i32
    %c0_i32_0 = arith.constant 0 : i32
    %c0_i32_1 = arith.constant 0 : i32
    return %c0_i32, %c0_i32_0 : i32, i32
  }
  func.func @transform_5(%arg0: i32) -> (i32, i32) {
    %c0_i32 = arith.constant 0 : i32
    %c0_i32_0 = arith.constant 0 : i32
    %c0_i32_1 = arith.constant 0 : i32
    return %c0_i32, %c0_i32_0 : i32, i32
  }
  func.func @transform_6(%arg0: i32) -> (i32, i32) {
    %c0_i32 = arith.constant 0 : i32
    %c0_i32_0 = arith.constant 0 : i32
    %c0_i32_1 = arith.constant 0 : i32
    return %c0_i32, %c0_i32_0 : i32, i32
  }
  func.func @transform_7(%arg0: i32) -> (i32, i32) {
    %c0_i32 = arith.constant 0 : i32
    %c0_i32_0 = arith.constant 0 : i32
    %c0_i32_1 = arith.constant 0 : i32
    return %c0_i32, %c0_i32_0 : i32, i32
  }
  func.func @transform_8(%arg0: i32) -> (i32, i32) {
    %c0_i32 = arith.constant 0 : i32
    %c0_i32_0 = arith.constant 0 : i32
    %c0_i32_1 = arith.constant 0 : i32
    return %c0_i32, %c0_i32_0 : i32, i32
  }
  func.func @transform_9(%arg0: i32) -> (i32, i32) {
    %c0_i32 = arith.constant 0 : i32
    %c0_i32_0 = arith.constant 0 : i32
    %c0_i32_1 = arith.constant 0 : i32
    return %c0_i32, %c0_i32_0 : i32, i32
  }
  func.func @transform_10(%arg0: i32) -> (i32, i32) {
    %c0_i32 = arith.constant 0 : i32
    %c0_i32_0 = arith.constant 0 : i32
    return %arg0, %c0_i32 : i32, i32
  }
}

</mosaic_0001>

<bundles_post_ra>
// kernel: tpu_custom_call.1
= control target key start
LH: loop header
LB: loop body
LE: loop exit
PB: predicated region body
PF: predicated region fallthrough
CT: control target
= control target key end

     0   :  { %v1300_v2 = vmov 0   ;;  %v1301_v5 = vmov 0.0|0.0   ;;  %s1863_s0 = inlined_call_operand.vmem [shape: s32[64,1], index: 0, kind: input, shape index: {}]   ;;  %s1864_s1 = inlined_call_operand.vmem [shape: s32[64,1], index: 1, kind: input, shape index: {}]   ;;  %s1865_s2 = inlined_call_operand.vmem [shape: s32[64,1], index: 2, kind: input, shape index: {}]   ;;  %s1866_s3 = inlined_call_operand.vmem [shape: f32[128,32], index: 3, kind: input, shape index: {}]   ;;  %s1867_s4 = inlined_call_operand.vmem [shape: f32[128,32], index: 4, kind: input, shape index: {}]   ;;  %s1868_s5 = inlined_call_operand.vmem [shape: f32[128,32], index: 5, kind: input, shape index: {}]   ;;  %s1869_s6 = inlined_call_operand.vmem [shape: f32[96,128], index: 6, kind: input, shape index: {}]   ;;  %s1870_s7 = inlined_call_operand.vmem [shape: f32[1,128], index: 7, kind: input, shape index: {}]   ;;  %s1871_s8 = inlined_call_operand.vmem [shape: f32[128,128], index: 8, kind: input, shape index: {}]   ;;  %s1872_s9 = inlined_call_operand.vmem [shape: f32[1,128], index: 9, kind: input, shape index: {}]   ;;  %s1873_s10 = inlined_call_operand.hbm [shape: f32[8,128], index: 10, kind: output, shape index: {}]  }
   0x1   :  { %v38_v0 = vld [vmem:[%s1863_s0 + $0x10] sm:$0xff]  ;;  %v36_v1 = vld [vmem:[%s1863_s0] sm:$0xff]  ;;  %1275 = vset.pattern.permute.xlu1 %v1300_v2  ;;  %1274 = vset.pattern.permute.xlu0 %v1300_v2  ;;  %v39_v3 = vld [vmem:[%s1863_s0 + $0x18] sm:$0xff] }
   0x2   :  { %53 = vperm.xlu1 %1275, %v38_v0   ;;  %47 = vperm.xlu0 %1274, %v36_v1   ;;  %v37_v4 = vld [vmem:[%s1863_s0 + $0x8] sm:$0xff]  ;;  %v40_v7 = vld [vmem:[%s1863_s0 + $0x20] sm:$0xff]  ;;  %v144_v10 = vld [vmem:[%s1866_s3 + $0x10] sm:$0xff] }
   0x3   :  { %1153 = vmatprep.subr.bf16.mxu0 %v1301_v5  ;;  %1177 = vmatprep.subr.bf16.mxu1 %v1301_v5  ;;  %v41_v6 = vld [vmem:[%s1863_s0 + $0x28] sm:$0xff]  ;;  %v142_v8 = vld [vmem:[%s1866_s3] sm:$0xff]  ;;  %v145_v12 = vld [vmem:[%s1866_s3 + $0x18] sm:$0xff] }
   0x4   :  { %v143_v9 = vld [vmem:[%s1866_s3 + $0x8] sm:$0xff] }
   0x5   :  { %v1154_v11 = vpack.c.bf16 %v143_v9, %v142_v8 }
   0x6   :  { %56 = vperm.xlu1 %1275, %v39_v3   ;;  %50 = vperm.xlu0 %1274, %v37_v4  }
   0xa   :  { %62 = vperm.xlu1 %1275, %v41_v6   ;;  %59 = vperm.xlu0 %1274, %v40_v7  }
   0xb   :  { %15 = vsyncpa [#allocation3], 0  ;;  %v43_v13 = vld [vmem:[%s1863_s0 + $0x38] sm:$0xff]  ;;  %v42_v14 = vld [vmem:[%s1863_s0 + $0x30] sm:$0xff]  ;;  %1155 = vmatpush3.bf16.msra.mxu0 %v1154_v11  ;;  %v1157_v15 = vpack.c.bf16 %v145_v12, %v144_v10  ;;  %vm1302_vm0 = vmmov 0   ;;  %v1303_v46 = vmov 0.0   ;;  %v44_v12 = vlaneseq }
   0xc   :  { %1156 = vmatprep.subr.bf16.mxu0 %v1301_v5  ;;  %v146_v16 = vld [vmem:[%s1866_s3 + $0x20] sm:$0xff]  ;;  %v147_v17 = vld [vmem:[%s1866_s3 + $0x28] sm:$0xff]  ;;  %v148_v21 = vld [vmem:[%s1866_s3 + $0x30] sm:$0xff]  ;;  %1018 = vmatprep.mubr.msk.f32.mxu0 %vm1302_vm0, %v1303_v46  ;;  %vm166_vm9 = vcmask 1041409   ;;  %vm168_vm12 = vcmask 1042434   ;;  %vm170_vm15 = vcmask 1043459  }
   0xd   :  { %v252_v18 = vld [vmem:[%s1864_s1 + $0x8] sm:$0xff]  ;;  %v251_v19 = vld [vmem:[%s1864_s1] sm:$0xff]  ;;  %v1160_v20 = vpack.c.bf16 %v147_v17, %v146_v16  ;;  %v149_v22 = vld [vmem:[%s1866_s3 + $0x38] sm:$0xff]  ;;  %1053 = vmatprep.mubr.msk.f32.mxu1 %vm1302_vm0, %v1303_v46  ;;  %s1304_s20 = smov 32   ;;  %s1305_s21 = smov 64  }
   0xe   :  { %68 = vperm.xlu1 %1275, %v43_v13   ;;  %65 = vperm.xlu0 %1274, %v42_v14   ;;  %v457_v23 = vld [vmem:[%s1865_s2] sm:$0xff]  ;;  %v253_v24 = vld [vmem:[%s1864_s1 + $0x10] sm:$0xff]  ;;  %v1163_v25 = vpack.c.bf16 %v149_v22, %v148_v21  ;;  %v151_v27 = vld [vmem:[%s1866_s3 + $0x48] sm:$0xff]  ;;  %v1552_v13 = vand.u32 127, %v44_v12  ;;  %s1306_s26 = smov [#allocation2]  }
   0xf   :  { %1158 = vmatpush3.bf16.msra.mxu0 %v1157_v15  ;;  %v150_v26 = vld [vmem:[%s1866_s3 + $0x40] sm:$0xff]  ;;  %v254_v28 = vld [vmem:[%s1864_s1 + $0x18] sm:$0xff]  ;;  %v458_v29 = vld [vmem:[%s1865_s2 + $0x8] sm:$0xff]  ;;  %s870_s27 = sshll.u32 %s1306_s26, 4  ;;  %s871_s27 = int_to_ptr.vmem [resolvable:$true] %s870_s27 }
  0x10   :  { %1159 = vmatprep.subr.bf16.mxu0 %v1301_v5  ;;  %v1166_v30 = vpack.c.bf16 %v151_v27, %v150_v26  ;;  %v152_v31 = vld [vmem:[%s1866_s3 + $0x50] sm:$0xff]  ;;  %v153_v32 = vld [vmem:[%s1866_s3 + $0x58] sm:$0xff]  ;;  %v355_v33 = vld [vmem:[%s1867_s4] sm:$0xff]  ;;  %p1281_p1 = scmp.lt.s32.totalorder %s871_s27, %s871_s27 }
  0x11   :  { %v356_v34 = vld [vmem:[%s1867_s4 + $0x8] sm:$0xff]  ;;  %v255_v35 = vld [vmem:[%s1864_s1 + $0x20] sm:$0xff]  ;;  %v459_v36 = vld [vmem:[%s1865_s2 + $0x10] sm:$0xff]  ;;  %v1169_v37 = vpack.c.bf16 %v153_v32, %v152_v31 }
  0x12   :  { %263 = vperm.xlu1 %1275, %v252_v18   ;;  %260 = vperm.xlu0 %1274, %v251_v19   ;;  %v1178_v38 = vpack.c.bf16 %v356_v34, %v355_v33  ;;  %v154_v39 = vld [vmem:[%s1866_s3 + $0x60] sm:$0xff]  ;;  %v155_v40 = vld [vmem:[%s1866_s3 + $0x68] sm:$0xff]  ;;  %v460_v42 = vld [vmem:[%s1865_s2 + $0x18] sm:$0xff] }
  0x13   :  { %1161 = vmatpush3.bf16.msra.mxu0 %v1160_v20  ;;  %v256_v41 = vld [vmem:[%s1864_s1 + $0x28] sm:$0xff]  ;;  %v1172_v43 = vpack.c.bf16 %v155_v40, %v154_v39  ;;  %v156_v44 = vld [vmem:[%s1866_s3 + $0x70] sm:$0xff]  ;;  %v157_v45 = vld [vmem:[%s1866_s3 + $0x78] sm:$0xff] }
  0x14   :  { %1162 = vmatprep.subr.bf16.mxu0 %v1301_v5  ;;  %1179 = vmatpush3.bf16.msra.mxu1 %v1178_v38  ;;  %v257_v47 = vld [vmem:[%s1864_s1 + $0x30] sm:$0xff]  ;;  %v461_v48 = vld [vmem:[%s1865_s2 + $0x20] sm:$0xff]  ;;  %v1175_v49 = vpack.c.bf16 %v157_v45, %v156_v44  ;;  %v258_v50 = vld [vmem:[%s1864_s1 + $0x38] sm:$0xff] }
  0x15   :  { %1180 = vmatprep.subr.bf16.mxu1 %v1301_v5  ;;  %v462_v51 = vld [vmem:[%s1865_s2 + $0x28] sm:$0xff]  ;;  %v357_v52 = vld [vmem:[%s1867_s4 + $0x10] sm:$0xff]  ;;  %v358_v53 = vld [vmem:[%s1867_s4 + $0x18] sm:$0xff] }
  0x16   :  { %466 = vperm.xlu1 %1275, %v457_v23   ;;  %266 = vperm.xlu0 %1274, %v253_v24   ;;  %v1181_v54 = vpack.c.bf16 %v358_v53, %v357_v52  ;;  %v464_v55 = vld [vmem:[%s1865_s2 + $0x38] sm:$0xff]  ;;  %v463_v56 = vld [vmem:[%s1865_s2 + $0x30] sm:$0xff]  ;;  %v359_v57 = vld [vmem:[%s1867_s4 + $0x20] sm:$0xff] }
  0x17   :  { %1164 = vmatpush3.bf16.msra.mxu0 %v1163_v25  ;;  %v360_v58 = vld [vmem:[%s1867_s4 + $0x28] sm:$0xff]  ;;  %v361_v60 = vld [vmem:[%s1867_s4 + $0x30] sm:$0xff]  ;;  %v362_v61 = vld [vmem:[%s1867_s4 + $0x38] sm:$0xff] }
  0x18   :  { %1165 = vmatprep.subr.bf16.mxu0 %v1301_v5  ;;  %1182 = vmatpush3.bf16.msra.mxu1 %v1181_v54  ;;  %v1184_v59 = vpack.c.bf16 %v360_v58, %v359_v57  ;;  %v1187_v62 = vpack.c.bf16 %v362_v61, %v361_v60  ;;  %v363_v63 = vld [vmem:[%s1867_s4 + $0x40] sm:$0xff]  ;;  %v364_v0 = vld [vmem:[%s1867_s4 + $0x48] sm:$0xff]  ;;  %v365_v2 = vld [vmem:[%s1867_s4 + $0x50] sm:$0xff] }
  0x19   :  { %1183 = vmatprep.subr.bf16.mxu1 %v1301_v5  ;;  %v1190_v1 = vpack.c.bf16 %v364_v0, %v363_v63  ;;  %v366_v3 = vld [vmem:[%s1867_s4 + $0x58] sm:$0xff]  ;;  %v367_v6 = vld [vmem:[%s1867_s4 + $0x60] sm:$0xff]  ;;  %v368_v7 = vld [vmem:[%s1867_s4 + $0x68] sm:$0xff] }
  0x1a   :  { %269 = vperm.xlu1 %1275, %v254_v28   ;;  %469 = vperm.xlu0 %1274, %v458_v29   ;;  %v1193_v4 = vpack.c.bf16 %v366_v3, %v365_v2  ;;  %v1196_v8 = vpack.c.bf16 %v368_v7, %v367_v6  ;;  %v369_v9 = vld [vmem:[%s1867_s4 + $0x70] sm:$0xff]  ;;  %v370_v10 = vld [vmem:[%s1867_s4 + $0x78] sm:$0xff] }
  0x1b   :  { %1167 = vmatpush3.bf16.msra.mxu0 %v1166_v30  ;;  %v1199_v11 = vpack.c.bf16 %v370_v10, %v369_v9  ;;  %v1583_v57 = vld [vmem:[%s1868_s5 + $0x10] sm:$0xff]  ;;  %v1588_v58 = vld [vmem:[%s1868_s5 + $0x18] sm:$0xff] }
  0x1c   :  { %1168 = vmatprep.subr.bf16.mxu0 %v1301_v5  ;;  %1185 = vmatpush3.bf16.msra.mxu1 %v1184_v59 }
  0x1d   :  { %1186 = vmatprep.subr.bf16.mxu1 %v1301_v5 }
  0x1e   :  { %272 = vperm.xlu1 %1275, %v255_v35   ;;  %472 = vperm.xlu0 %1274, %v459_v36  }
  0x1f   :  { %1170 = vmatpush3.bf16.msra.mxu0 %v1169_v37 }
  0x20   :  { %1171 = vmatprep.subr.bf16.mxu0 %v1301_v5  ;;  %1188 = vmatpush3.bf16.msra.mxu1 %v1187_v62 }
  0x21   :  { %1189 = vmatprep.subr.bf16.mxu1 %v1301_v5 }
  0x22   :  { %275 = vperm.xlu1 %1275, %v256_v41   ;;  %475 = vperm.xlu0 %1274, %v460_v42  }
  0x23   :  { %1173 = vmatpush3.bf16.msra.mxu0 %v1172_v43 }
  0x24   :  { %1174 = vmatprep.subr.bf16.mxu0 %v1301_v5  ;;  %1191 = vmatpush3.bf16.msra.mxu1 %v1190_v1 }
  0x25   :  { %1192 = vmatprep.subr.bf16.mxu1 %v1301_v5 }
  0x26   :  { %278 = vperm.xlu1 %1275, %v257_v47   ;;  %478 = vperm.xlu0 %1274, %v461_v48  }
  0x27   :  { %1176 = vmatpush3.bf16.msra.mxu0 %v1175_v49  ;;  %v1573_v49 = vld [vmem:[%s1868_s5] sm:$0xff] }
  0x28   :  { %1201 = vmatprep.subr.bf16.mxu0 %v1301_v5  ;;  %1194 = vmatpush3.bf16.msra.mxu1 %v1193_v4  ;;  %v1205_v4 = vpack.c.bf16 %v1588_v58, %v1583_v57 }
  0x29   :  { %1195 = vmatprep.subr.bf16.mxu1 %v1301_v5 }
  0x2a   :  { %281 = vperm.xlu1 %1275, %v258_v50   ;;  %481 = vperm.xlu0 %1274, %v462_v51  }
  0x2c   :  { %1197 = vmatpush3.bf16.msra.mxu1 %v1196_v8 }
  0x2d   :  { %1198 = vmatprep.subr.bf16.mxu1 %v1301_v5 }
  0x2e   :  { %487 = vperm.xlu1 %1275, %v464_v55   ;;  %484 = vperm.xlu0 %1274, %v463_v56   ;;  %v1578_v56 = vld [vmem:[%s1868_s5 + $0x8] sm:$0xff] }
  0x2f   :  { %v1202_v3 = vpack.c.bf16 %v1578_v56, %v1573_v49 }
  0x30   :  { %1200 = vmatpush3.bf16.msra.mxu1 %v1199_v11 }
  0x31   :  { %1225 = vmatprep.subr.bf16.mxu1 %v1301_v5 }
  0x81   :  { %v54_v14 = vpop.permute.xlu1 %53  ;;  %v48_v15 = vpop.permute.xlu0 %47 }
  0x82   :  { %vm72_vm1 = vcmp.eq.s32.totalorder %v54_v14, %v1552_v13  ;;  %vm70_vm2 = vcmp.eq.s32.totalorder %v48_v15, %v1552_v13 }
  0x83   :  { %v880_v16 = vsel %vm72_vm1, 1.0, %v1303_v46  ;;  %v878_v17 = vsel %vm70_vm2, 1.0, %v1303_v46  ;;  %vm172_vm1 = vcmask 1044484   ;;  %vm174_vm2 = vcmask 1045509  }
  0x84   :  { %v106_v18 = vrot.slane %v880_v16, 4  ;;  %v94_v19 = vrot.slane %v878_v17, 4 }
  0x85   :  { %v57_v20 = vpop.permute.xlu1 %56  ;;  %v51_v21 = vpop.permute.xlu0 %50 }
  0x86   :  { %v107_v22 = vadd.f32 %v880_v16, %v106_v18  ;;  %vm73_vm3 = vcmp.eq.s32.totalorder %v57_v20, %v1552_v13  ;;  %vm71_vm4 = vcmp.eq.s32.totalorder %v51_v21, %v1552_v13  ;;  %v95_v26 = vadd.f32 %v878_v17, %v94_v19 }
  0x87   :  { %v881_v23 = vsel %vm73_vm3, 1.0, %v1303_v46  ;;  %v879_v24 = vsel %vm71_vm4, 1.0, %v1303_v46 }
  0x88   :  { %v108_v25 = vrot.slane %v107_v22, 2  ;;  %v112_v27 = vrot.slane %v881_v23, 4  ;;  %v100_v28 = vrot.slane %v879_v24, 4  ;;  %v96_v34 = vrot.slane %v95_v26, 2 }
  0x89   :  { %v63_v29 = vpop.permute.xlu1 %62  ;;  %v60_v30 = vpop.permute.xlu0 %59 }
  0x8a   :  { %v113_v31 = vadd.f32 %v881_v23, %v112_v27  ;;  %v101_v32 = vadd.f32 %v879_v24, %v100_v28  ;;  %vm75_vm5 = vcmp.eq.s32.totalorder %v63_v29, %v1552_v13  ;;  %vm74_vm6 = vcmp.eq.s32.totalorder %v60_v30, %v1552_v13 }
  0x8b   :  { %v109_v33 = vadd.f32 %v108_v25, %v107_v22  ;;  %v883_v36 = vsel %vm75_vm5, 1.0, %v1303_v46  ;;  %v882_v37 = vsel %vm74_vm6, 1.0, %v1303_v46  ;;  %v97_v45 = vadd.f32 %v96_v34, %v95_v26 }
  0x8c   :  { %v102_v35 = vrot.slane %v101_v32, 2  ;;  %v114_v40 = vrot.slane %v113_v31, 2  ;;  %v124_v42 = vrot.slane %v883_v36, 4  ;;  %v118_v43 = vrot.slane %v882_v37, 4 }
  0x8d   :  { %v69_v38 = vpop.permute.xlu1 %68  ;;  %v66_v39 = vpop.permute.xlu0 %65  ;;  %v110_v44 = vrot.slane %v109_v33, 1  ;;  %v98_v16 = vrot.slane %v97_v45, 1  ;;  %vm176_vm5 = vcmask 1046534   ;;  %vm178_vm6 = vcmask 1047559  }
  0x8e   :  { %v103_v41 = vadd.f32 %v102_v35, %v101_v32  ;;  %vm77_vm7 = vcmp.eq.s32.totalorder %v69_v38, %v1552_v13  ;;  %vm76_vm8 = vcmp.eq.s32.totalorder %v66_v39, %v1552_v13  ;;  %v125_v50 = vadd.f32 %v883_v36, %v124_v42 }
  0x8f   :  { %v885_v47 = vsel %vm77_vm7, 1.0, %v1303_v46  ;;  %v884_v48 = vsel %vm76_vm8, 1.0, %v1303_v46  ;;  %v119_v51 = vadd.f32 %v882_v37, %v118_v43  ;;  %v115_v59 = vadd.f32 %v114_v40, %v113_v31 }
  0x90   :  { %v136_v52 = vrot.slane %v885_v47, 4  ;;  %v130_v53 = vrot.slane %v884_v48, 4  ;;  %v104_v60 = vrot.slane %v103_v41, 1  ;;  %v126_v61 = vrot.slane %v125_v50, 2 }
  0x91   :  { %v264_v54 = vpop.permute.xlu1 %263  ;;  %v261_v55 = vpop.permute.xlu0 %260  ;;  %v120_v62 = vrot.slane %v119_v51, 2  ;;  %v111_v15 = vadd.f32 %v110_v44, %v109_v33  ;;  %v116_v17 = vrot.slane %v115_v59, 1  ;;  %v99_v33 = vadd.f32 %v98_v16, %v97_v45 }
  0x92   :  { %vm284_vm10 = vcmp.eq.s32.totalorder %v264_v54, %v1552_v13  ;;  %vm283_vm11 = vcmp.eq.s32.totalorder %v261_v55, %v1552_v13  ;;  %v137_v63 = vadd.f32 %v885_v47, %v136_v52  ;;  %v131_v0 = vadd.f32 %v884_v48, %v130_v53  ;;  %v1612_v53 = vld [vmem:[%s1868_s5 + $0x20] sm:$0xff]  ;;  %v1617_v54 = vld [vmem:[%s1868_s5 + $0x28] sm:$0xff] }
  0x93   :  { %v887_v1 = vsel %vm284_vm10, 1.0, %v1303_v46  ;;  %v886_v2 = vsel %vm283_vm11, 1.0, %v1303_v46  ;;  %v127_v6 = vadd.f32 %v126_v61, %v125_v50  ;;  %v121_v7 = vadd.f32 %v120_v62, %v119_v51 }
  0x94   :  { %v138_v8 = vrot.slane %v137_v63, 2  ;;  %v132_v9 = vrot.slane %v131_v0, 2  ;;  %v313_v12 = vrot.slane %v887_v1, 4  ;;  %v307_v14 = vrot.slane %v886_v2, 4 }
  0x95   :  { %v467_v10 = vpop.permute.xlu1 %466  ;;  %v267_v11 = vpop.permute.xlu0 %266  ;;  %v105_v18 = vadd.f32 %v104_v60, %v103_v41  ;;  %v128_v23 = vrot.slane %v127_v6, 1  ;;  %v122_v24 = vrot.slane %v121_v7, 1  ;;  %v117_v34 = vadd.f32 %v116_v17, %v115_v59 }
  0x96   :  { %vm489_vm13 = vcmp.eq.s32.totalorder %v467_v10, %v1552_v13  ;;  %vm285_vm14 = vcmp.eq.s32.totalorder %v267_v11, %v1552_v13  ;;  %v314_v19 = vadd.f32 %v887_v1, %v313_v12  ;;  %v308_v20 = vadd.f32 %v886_v2, %v307_v14 }
  0x97   :  { %v894_v21 = vsel %vm489_vm13, 1.0, %v1303_v46  ;;  %v888_v22 = vsel %vm285_vm14, 1.0, %v1303_v46  ;;  %v139_v25 = vadd.f32 %v138_v8, %v137_v63  ;;  %v133_v26 = vadd.f32 %v132_v9, %v131_v0  ;;  %v1630_v8 = vld [vmem:[%s1868_s5 + $0x38] sm:$0xff] }
  0x98   :  { %v315_v29 = vrot.slane %v314_v19, 2  ;;  %v309_v30 = vrot.slane %v308_v20, 2  ;;  %v513_v31 = vrot.slane %v894_v21, 4  ;;  %v319_v32 = vrot.slane %v888_v22, 4 }
  0x99   :  { %v270_v27 = vpop.permute.xlu1 %269  ;;  %v470_v28 = vpop.permute.xlu0 %469  ;;  %v167_v39 = vsel %vm166_vm9, %v105_v18, %v99_v33  ;;  %v129_v40 = vadd.f32 %v128_v23, %v127_v6  ;;  %v123_v45 = vadd.f32 %v122_v24, %v121_v7  ;;  %v140_v47 = vrot.slane %v139_v25, 1  ;;  %v1625_v7 = vld [vmem:[%s1868_s5 + $0x30] sm:$0xff]  ;;  %v1638_v18 = vld [vmem:[%s1868_s5 + $0x40] sm:$0xff] }
  0x9a   :  { %vm286_vm3 = vcmp.eq.s32.totalorder %v270_v27, %v1552_v13  ;;  %vm490_vm4 = vcmp.eq.s32.totalorder %v470_v28, %v1552_v13  ;;  %v316_v35 = vadd.f32 %v315_v29, %v314_v19  ;;  %v310_v36 = vadd.f32 %v309_v30, %v308_v20  ;;  %v1643_v19 = vld [vmem:[%s1868_s5 + $0x48] sm:$0xff]  ;;  %v1651_v24 = vld [vmem:[%s1868_s5 + $0x50] sm:$0xff] }
  0x9b   :  { %v514_v37 = vadd.f32 %v894_v21, %v513_v31  ;;  %v320_v38 = vadd.f32 %v888_v22, %v319_v32  ;;  %v889_v41 = vsel %vm286_vm3, 1.0, %v1303_v46  ;;  %v895_v42 = vsel %vm490_vm4, 1.0, %v1303_v46 }
  0x9c   :  { %v134_v48 = vrot.slane %v133_v26, 1  ;;  %v325_v51 = vrot.slane %v889_v41, 4  ;;  %v519_v52 = vrot.slane %v895_v42, 4  ;;  %v317_v55 = vrot.slane %v316_v35, 1 }
  0x9d   :  { %v273_v43 = vpop.permute.xlu1 %272  ;;  %v473_v44 = vpop.permute.xlu0 %472  ;;  %v321_v50 = vrot.slane %v320_v38, 2  ;;  %v311_v59 = vrot.slane %v310_v36, 1  ;;  %v515_v60 = vrot.slane %v514_v37, 2  ;;  %v169_v61 = vsel %vm168_vm12, %v111_v15, %v167_v39 }
  0x9e   :  { %vm287_vm7 = vcmp.eq.s32.totalorder %v273_v43, %v1552_v13  ;;  %vm491_vm8 = vcmp.eq.s32.totalorder %v473_v44, %v1552_v13  ;;  %v326_v62 = vadd.f32 %v889_v41, %v325_v51  ;;  %v520_v63 = vadd.f32 %v895_v42, %v519_v52 }
  0x9f   :  { %v890_v0 = vsel %vm287_vm7, 1.0, %v1303_v46  ;;  %v896_v1 = vsel %vm491_vm8, 1.0, %v1303_v46  ;;  %v135_v9 = vadd.f32 %v134_v48, %v133_v26  ;;  %v322_v10 = vadd.f32 %v321_v50, %v320_v38 }
  0xa0   :  { %v331_v11 = vrot.slane %v890_v0, 4  ;;  %v1208_v12 = vpack.c.bf16 %v1617_v54, %v1612_v53  ;;  %v327_v14 = vrot.slane %v326_v62, 2  ;;  %v525_v15 = vrot.slane %v896_v1, 4 }
  0xa1   :  { %v276_v2 = vpop.permute.xlu1 %275  ;;  %v476_v6 = vpop.permute.xlu0 %475  ;;  %v141_v16 = vadd.f32 %v140_v47, %v139_v25  ;;  %v171_v17 = vsel %vm170_vm15, %v117_v34, %v169_v61  ;;  %v318_v20 = vadd.f32 %v317_v55, %v316_v35  ;;  %v521_v21 = vrot.slane %v520_v63, 2  ;;  %v1656_v25 = vld [vmem:[%s1868_s5 + $0x58] sm:$0xff] }
  0xa2   :  { %v173_v22 = vsel %vm172_vm1, %v123_v45, %v171_v17  ;;  %v1211_v23 = vpack.c.bf16 %v1630_v8, %v1625_v7  ;;  %v312_v26 = vadd.f32 %v311_v59, %v310_v36  ;;  %v1658_v27 = vadd.f32 %v515_v60, %v514_v37 }
  0xa3   :  { %v332_v28 = vadd.f32 %v890_v0, %v331_v11  ;;  %v175_v29 = vsel %vm174_vm2, %v129_v40, %v173_v22  ;;  %v323_v32 = vrot.slane %v322_v10, 1  ;;  %vm288_vm10 = vcmp.eq.s32.totalorder %v276_v2, %v1552_v13 }
  0xa4   :  { %v177_v33 = vsel %vm176_vm5, %v135_v9, %v175_v29  ;;  %v1214_v34 = vpack.c.bf16 %v1643_v19, %v1638_v18  ;;  %v328_v35 = vadd.f32 %v327_v14, %v326_v62  ;;  %v526_v38 = vadd.f32 %v896_v1, %v525_v15 }
  0xa5   :  { %v279_v30 = vpop.permute.xlu1 %278  ;;  %v479_v31 = vpop.permute.xlu0 %478  ;;  %v179_v39 = vsel %vm178_vm6, %v141_v16, %v177_v33  ;;  %v1217_v36 = vpack.c.bf16 %v1656_v25, %v1651_v24  ;;  %v1668_v37 = vadd.f32 %v521_v21, %v520_v63  ;;  %v891_v40 = vsel %vm288_vm10, 1.0, %v1303_v46 }
  0xa6   :  { %1019 = vmatmul.mubr.f32.vlgmr.msra.gmra.mrb[0].mxu0 %v179_v39  ;;  %vm492_vm11 = vcmp.eq.s32.totalorder %v476_v6, %v1552_v13  ;;  %vm289_vm13 = vcmp.eq.s32.totalorder %v279_v30, %v1552_v13  ;;  %v379_v41 = vsel %vm166_vm9, %v318_v20, %v312_v26  ;;  %v517_v42 = vrot.slane %v1658_v27, 1 }
  0xa7   :  { %v333_v43 = vrot.slane %v332_v28, 2  ;;  %1203 = vmatpush3.bf16.msra.mxu0 %v1202_v3  ;;  %v337_v44 = vrot.slane %v891_v40, 4  ;;  %1088 = vmatprep.mubr.msk.f32.mxu0 %vm1302_vm0, %v1303_v46  ;;  %v324_v48 = vadd.f32 %v323_v32, %v322_v10  ;;  %v897_v50 = vsel %vm492_vm11, 1.0, %v1303_v46 }
  0xa8   :  { %1204 = vmatprep.subr.bf16.mxu0 %v1301_v5  ;;  %v892_v51 = vsel %vm289_vm13, 1.0, %v1303_v46  ;;  %vm493_vm14 = vcmp.eq.s32.totalorder %v479_v31, %v1552_v13  ;;  %v329_v52 = vrot.slane %v328_v35, 1  ;;  %v527_v55 = vrot.slane %v526_v38, 2 }
  0xa9   :  { %v282_v45 = vpop.permute.xlu1 %281  ;;  %v482_v47 = vpop.permute.xlu0 %481  ;;  %v338_v59 = vadd.f32 %v891_v40, %v337_v44  ;;  %v531_v49 = vrot.slane %v897_v50, 4  ;;  %v523_v56 = vrot.slane %v1668_v37, 1  ;;  %v343_v3 = vrot.slane %v892_v51, 4 }
  0xaa   :  { %v898_v60 = vsel %vm493_vm14, 1.0, %v1303_v46  ;;  %vm290_vm3 = vcmp.eq.s32.totalorder %v282_v45, %v1552_v13  ;;  %v334_v61 = vadd.f32 %v333_v43, %v332_v28  ;;  %vm494_vm4 = vcmp.eq.s32.totalorder %v482_v47, %v1552_v13 }
  0xab   :  { %v339_v62 = vrot.slane %v338_v59, 2  ;;  %v532_v63 = vadd.f32 %v897_v50, %v531_v49  ;;  %1206 = vmatpush3.bf16.msra.mxu0 %v1205_v4  ;;  %v537_v0 = vrot.slane %v898_v60, 4  ;;  %v344_v2 = vadd.f32 %v892_v51, %v343_v3 }
  0xac   :  { %1207 = vmatprep.subr.bf16.mxu0 %v1301_v5  ;;  %v893_v6 = vsel %vm290_vm3, 1.0, %v1303_v46  ;;  %v528_v9 = vadd.f32 %v527_v55, %v526_v38  ;;  %v899_v57 = vsel %vm494_vm4, 1.0, %v1303_v46  ;;  %v335_v4 = vrot.slane %v334_v61, 1 }
  0xad   :  { %v488_v1 = vpop.permute.xlu1 %487  ;;  %v340_v10 = vadd.f32 %v339_v62, %v338_v59  ;;  %v533_v11 = vrot.slane %v532_v63, 2  ;;  %v538_v14 = vadd.f32 %v898_v60, %v537_v0  ;;  %v485_v15 = vpop.permute.xlu0 %484  ;;  %v345_v16 = vrot.slane %v344_v2, 2  ;;  %v574_v60 = vld [vmem:[%s1868_s5 + $0x68] sm:$0xff] }
  0xae   :  { %vm496_vm7 = vcmp.eq.s32.totalorder %v488_v1, %v1552_v13  ;;  %v349_v17 = vrot.slane %v893_v6, 4  ;;  %v543_v22 = vrot.slane %v899_v57, 4  ;;  %vm495_vm8 = vcmp.eq.s32.totalorder %v485_v15, %v1552_v13 }
  0xaf   :  { %v901_v58 = vsel %vm496_vm7, 1.0, %v1303_v46  ;;  %v341_v20 = vrot.slane %v340_v10, 1  ;;  %v539_v21 = vrot.slane %v538_v14, 2  ;;  %1209 = vmatpush3.bf16.msra.mxu0 %v1208_v12  ;;  %v346_v26 = vadd.f32 %v345_v16, %v344_v2 }
  0xb0   :  { %v350_v28 = vadd.f32 %v893_v6, %v349_v17  ;;  %1210 = vmatprep.subr.bf16.mxu0 %v1301_v5  ;;  %v555_v29 = vrot.slane %v901_v58, 4  ;;  %v330_v30 = vadd.f32 %v329_v52, %v328_v35  ;;  %v534_v31 = vadd.f32 %v533_v11, %v532_v63 }
  0xb1   :  { %v540_v32 = vadd.f32 %v539_v21, %v538_v14  ;;  %v544_v33 = vadd.f32 %v899_v57, %v543_v22  ;;  %v347_v38 = vrot.slane %v346_v26, 1  ;;  %v900_v43 = vsel %vm495_vm8, 1.0, %v1303_v46  ;;  %v576_v14 = vld [vmem:[%s1868_s5 + $0x78] sm:$0xff]  ;;  %v678_v21 = vld [vmem:[%s1869_s6 + $0x10] sm:$0xff] }
  0xb2   :  { %v351_v39 = vrot.slane %v350_v28, 2  ;;  %v556_v40 = vadd.f32 %v901_v58, %v555_v29  ;;  %v380_v53 = vsel %vm168_vm12, %v324_v48, %v379_v41  ;;  %v336_v54 = vadd.f32 %v335_v4, %v334_v61  ;;  %v676_v4 = vld [vmem:[%s1869_s6] sm:$0xff] }
  0xb3   :  { %v545_v12 = vrot.slane %v544_v33, 2  ;;  %1212 = vmatpush3.bf16.msra.mxu0 %v1211_v23  ;;  %v549_v44 = vrot.slane %v900_v43, 4  ;;  %v529_v45 = vrot.slane %v528_v9, 1  ;;  %v342_v13 = vadd.f32 %v341_v20, %v340_v10  ;;  %v573_v23 = vld [vmem:[%s1868_s5 + $0x60] sm:$0xff]  ;;  %v677_v20 = vld [vmem:[%s1869_s6 + $0x8] sm:$0xff] }
  0xb4   :  { %v352_v35 = vadd.f32 %v351_v39, %v350_v28  ;;  %v557_v47 = vrot.slane %v556_v40, 2  ;;  %1213 = vmatprep.subr.bf16.mxu0 %v1301_v5  ;;  %v535_v50 = vrot.slane %v534_v31, 1  ;;  %v348_v51 = vadd.f32 %v347_v38, %v346_v26  ;;  %v679_v26 = vld [vmem:[%s1869_s6 + $0x18] sm:$0xff]  ;;  %v680_v29 = vld [vmem:[%s1869_s6 + $0x20] sm:$0xff] }
  0xb5   :  { %v546_v52 = vadd.f32 %v545_v12, %v544_v33  ;;  %v550_v55 = vadd.f32 %v900_v43, %v549_v44  ;;  %v524_v59 = vadd.f32 %v523_v56, %v1668_v37  ;;  %v541_v41 = vrot.slane %v540_v32, 1  ;;  %v683_v33 = vld [vmem:[%s1869_s6 + $0x38] sm:$0xff]  ;;  %v684_v43 = vld [vmem:[%s1869_s6 + $0x40] sm:$0xff]  ;;  %v686_v44 = vld [vmem:[%s1869_s6 + $0x50] sm:$0xff] }
  0xb6   :  { %v353_v48 = vrot.slane %v352_v35, 1  ;;  %v381_v49 = vsel %vm170_vm15, %v330_v30, %v380_v53  ;;  %v558_v7 = vadd.f32 %v557_v47, %v556_v40  ;;  %v530_v56 = vadd.f32 %v529_v45, %v528_v9  ;;  %v681_v30 = vld [vmem:[%s1869_s6 + $0x28] sm:$0xff]  ;;  %v687_v45 = vld [vmem:[%s1869_s6 + $0x58] sm:$0xff] }
  0xb7   :  { %v547_v3 = vrot.slane %v546_v52, 1  ;;  %v551_v8 = vrot.slane %v550_v55, 2  ;;  %1215 = vmatpush3.bf16.msra.mxu0 %v1214_v34  ;;  %v382_v37 = vsel %vm172_vm1, %v336_v54, %v381_v49  ;;  %v518_v18 = vadd.f32 %v517_v42, %v1658_v27  ;;  %v575_v42 = vld [vmem:[%s1868_s5 + $0x70] sm:$0xff]  ;;  %v685_v53 = vld [vmem:[%s1869_s6 + $0x48] sm:$0xff] }
  0xb8   :  { %1216 = vmatprep.subr.bf16.mxu0 %v1301_v5  ;;  %v354_v61 = vadd.f32 %v353_v48, %v352_v35  ;;  %v383_v62 = vsel %vm174_vm2, %v342_v13, %v382_v37  ;;  %v536_v19 = vadd.f32 %v535_v50, %v534_v31  ;;  %v542_v0 = vadd.f32 %v541_v41, %v540_v32  ;;  %v682_v32 = vld [vmem:[%s1869_s6 + $0x30] sm:$0xff]  ;;  %v775_v37 = vld [vmem:[%s1871_s8 + $0x28] sm:$0xff] }
  0xb9   :  { %v552_v34 = vadd.f32 %v551_v8, %v550_v55  ;;  %v384_v63 = vsel %vm176_vm5, %v348_v51, %v383_v62  ;;  %v1220_v1 = vpack.c.bf16 %v574_v60, %v573_v23  ;;  %v585_v6 = vsel %vm166_vm9, %v524_v59, %v518_v18  ;;  %v771_v55 = vld [vmem:[%s1871_s8 + $0x8] sm:$0xff]  ;;  %v773_v8 = vld [vmem:[%s1871_s8 + $0x18] sm:$0xff]  ;;  %v774_v60 = vld [vmem:[%s1871_s8 + $0x20] sm:$0xff] }
  0xba   :  { %v385_v2 = vsel %vm178_vm6, %v354_v61, %v384_v63  ;;  %v548_v9 = vadd.f32 %v547_v3, %v546_v52  ;;  %v559_v10 = vrot.slane %v558_v7, 1  ;;  %v586_v27 = vsel %vm168_vm12, %v530_v56, %v585_v6  ;;  %v770_v52 = vld [vmem:[%s1871_s8] sm:$0xff]  ;;  %v776_v61 = vld [vmem:[%s1871_s8 + $0x30] sm:$0xff]  ;;  %v783_v6 = vld [vmem:[%s1871_s8 + $0x68] sm:$0xff] }
  0xbb   :  { %v553_v11 = vrot.slane %v552_v34, 1  ;;  %1218 = vmatpush3.bf16.msra.mxu0 %v1217_v36  ;;  %1054 = vmatmul.mubr.f32.vlgmr.msra.gmra.mrb[0].mxu1 %v385_v2  ;;  %v587_v15 = vsel %vm170_vm15, %v536_v19, %v586_v27  ;;  %v1223_v16 = vpack.c.bf16 %v576_v14, %v575_v42  ;;  %v1226_v22 = vpack.c.bf16 %v677_v20, %v676_v4  ;;  %v778_v18 = vld [vmem:[%s1871_s8 + $0x40] sm:$0xff]  ;;  %v779_v19 = vld [vmem:[%s1871_s8 + $0x48] sm:$0xff]  ;;  %v780_v63 = vld [vmem:[%s1871_s8 + $0x50] sm:$0xff] }
  0xbc   :  { %1219 = vmatprep.subr.bf16.mxu0 %v1301_v5  ;;  %1115 = vmatprep.mubr.msk.f32.mxu1 %vm1302_vm0, %v1303_v46  ;;  %v588_v25 = vsel %vm172_vm1, %v542_v0, %v587_v15  ;;  %v560_v36 = vadd.f32 %v559_v10, %v558_v7  ;;  %v1229_v28 = vpack.c.bf16 %v679_v26, %v678_v21  ;;  %vm671_vm9 = vcmask 261120   ;;  %v772_v7 = vld [vmem:[%s1871_s8 + $0x10] sm:$0xff]  ;;  %v781_v0 = vld [vmem:[%s1871_s8 + $0x58] sm:$0xff]  ;;  %v782_v2 = vld [vmem:[%s1871_s8 + $0x60] sm:$0xff] }
  0xbd   :  { %v554_v24 = vadd.f32 %v553_v11, %v552_v34  ;;  %v589_v17 = vsel %vm174_vm2, %v548_v9, %v588_v25  ;;  %1227 = vmatpush3.bf16.msra.mxu1 %v1226_v22  ;;  %v1232_v31 = vpack.c.bf16 %v681_v30, %v680_v29  ;;  %v1235_v38 = vpack.c.bf16 %v683_v33, %v682_v32  ;;  %v784_v10 = vld [vmem:[%s1871_s8 + $0x70] sm:$0xff]  ;;  %v785_v11 = vld [vmem:[%s1871_s8 + $0x78] sm:$0xff]  ;;  %v902_v42 = vld [vmem:[%s1870_s7] ss:$0 sm:$0xff] }
  0xbe   :  { %1228 = vmatprep.subr.bf16.mxu1 %v1301_v5  ;;  %v1238_v54 = vpack.c.bf16 %v685_v53, %v684_v43  ;;  %v1241_v35 = vpack.c.bf16 %v687_v45, %v686_v44  ;;  %vm673_vm12 = vcmask 523264   ;;  %vm695_vm15 = vcmask 785408  }
  0xbf   :  { %1221 = vmatpush3.bf16.msra.mxu0 %v1220_v1  ;;  %v590_v57 = vsel %vm176_vm5, %v554_v24, %v589_v17  ;;  %v1244_v49 = vpack.c.bf16 %v771_v55, %v770_v52  ;;  %v1247_v23 = vpack.c.bf16 %v773_v8, %v772_v7  ;;  %v1250_v56 = vpack.c.bf16 %v775_v37, %v774_v60 }
  0xc0   :  { %1222 = vmatprep.subr.bf16.mxu0 %v1301_v5  ;;  %v591_v58 = vsel %vm178_vm6, %v560_v36, %v590_v57  ;;  %v1256_v34 = vpack.c.bf16 %v779_v19, %v778_v18  ;;  %v1259_v1 = vpack.c.bf16 %v781_v0, %v780_v63  ;;  %v1262_v9 = vpack.c.bf16 %v783_v6, %v782_v2 }
  0xc1   :  { %1230 = vmatpush3.bf16.msra.mxu1 %v1229_v28  ;;  %v1265_v27 = vpack.c.bf16 %v785_v11, %v784_v10 }
  0xc2   :  { %1231 = vmatprep.subr.bf16.mxu1 %v1301_v5 }
  0xc3   :  { %1224 = vmatpush3.bf16.msra.mxu0 %v1223_v16 }
  0xc5   :  { %1233 = vmatpush3.bf16.msra.mxu1 %v1232_v31 }
  0xc6   :  { %1089 = vmatmul.mubr.f32.vlgmr.msra.gmra.mrb[2].mxu0 %v591_v58  ;;  %1234 = vmatprep.subr.bf16.mxu1 %v1301_v5 }
  0xc9   :  { %1236 = vmatpush3.bf16.msra.mxu1 %v1235_v38 }
  0xca   :  { %1237 = vmatprep.subr.bf16.mxu1 %v1301_v5 }
  0xcd   :  { %1239 = vmatpush3.bf16.msra.mxu1 %v1238_v54 }
  0xce   :  { %1240 = vmatprep.subr.bf16.mxu1 %v1301_v5 }
  0xd1   :  { %1242 = vmatpush3.bf16.msra.mxu1 %v1241_v35 }
  0xd2   :  { %1243 = vmatprep.subr.bf16.mxu1 %v1301_v5 }
 0x179   :  { %v247_v39 = vpop.f32.mrb[0].mxu0 }
 0x17a   :  { %v1020_v40 = vpop.f32.mrb[1].mxu0 }
 0x18e   :  { %v453_v12 = vpop.f32.mrb[0].mxu1 }
 0x18f   :  { %664 = vrot.lane.b32.xlu0 %v453_v12, %s1304_s20  ;;  %v1055_v13 = vpop.f32.mrb[1].mxu1 }
 0x199   :  { %v659_v47 = vpop.f32.mrb[2].mxu0 }
 0x19a   :  { %668 = vrot.lane.b32.xlu1 %v659_v47, %s1305_s21  ;;  %v1090_v50 = vpop.f32.mrb[3].mxu0 }
 0x201   :  { %v665_v51 = vpop.permute.xlu0 %664 }
 0x202   :  { %v672_v59 = vsel %vm671_vm9, %v247_v39, %v665_v51 }
 0x20c   :  { %v669_v41 = vpop.permute.xlu1 %668 }
 0x20d   :  { %v674_v48 = vsel %vm673_vm12, %v672_v59, %v669_v41 }
 0x20e   :  { %v675_v3 = vmul.f32 0.125, %v674_v48 }
 0x210   :  { %1116 = vmatmul.mubr.msk.f32.vlgmr.msra.gmra.mrb[2].mxu1 %vm695_vm15, %v675_v3 }
 0x211   :  { %1245 = vmatpush3.bf16.msra.mxu1 %v1244_v49  ;;  %1150 = vmatprep.mubr.msk.f32.mxu1 %vm1302_vm0, %v1303_v46  ;;  %v777_v46 = vld [vmem:[%s1871_s8 + $0x38] sm:$0xff]  ;;  %s1276_s8 = scalar_lea.vmem %s871_s27, 128 }
 0x212   :  { %1246 = vmatprep.subr.bf16.mxu1 %v1301_v5  ;;  %v1253_v62 = vpack.c.bf16 %v777_v46, %v776_v61  ;;  %p1277_p0 = scmp.ne.s32.totalorder %s871_s27, %s1276_s8  ;;  %p1282_p2 = scmp.lt.s32.totalorder %s1276_s8, %s1276_s8 }
 0x214   :  { %p1283_p3 = por %p1282_p2, %p1281_p1 }
 0x215   :  { %1248 = vmatpush3.bf16.msra.mxu1 %v1247_v23 }
 0x216   :  { %1249 = vmatprep.subr.bf16.mxu1 %v1301_v5  ;;  %p1284_p4 = pnand %p1283_p3, %p1277_p0 }
 0x219   :  { %1251 = vmatpush3.bf16.msra.mxu1 %v1250_v56 }
 0x21a   :  { %1252 = vmatprep.subr.bf16.mxu1 %v1301_v5 }
 0x21d   :  { %1254 = vmatpush3.bf16.msra.mxu1 %v1253_v62 }
 0x21e   :  { %1255 = vmatprep.subr.bf16.mxu1 %v1301_v5 }
 0x221   :  { %1257 = vmatpush3.bf16.msra.mxu1 %v1256_v34 }
 0x222   :  { %1258 = vmatprep.subr.bf16.mxu1 %v1301_v5 }
 0x225   :  { %1260 = vmatpush3.bf16.msra.mxu1 %v1259_v1 }
 0x226   :  { %1261 = vmatprep.subr.bf16.mxu1 %v1301_v5 }
 0x229   :  { %1263 = vmatpush3.bf16.msra.mxu1 %v1262_v9 }
 0x22a   :  { %1264 = vmatprep.subr.bf16.mxu1 %v1301_v5  ;;  %v904_v5 = vld [vmem:[%s1872_s9] ss:$0 sm:$0xff] }
 0x22d   :  { %1266 = vmatpush3.bf16.msra.mxu1 %v1265_v27 }
 0x2e3   :  { %v765_v14 = vpop.f32.mrb[2].mxu1 }
 0x2e4   :  { %v766_v15 = vadd.f32 %v902_v42, %v765_v14  ;;  %v1117_v24 = vpop.f32.mrb[3].mxu1 }
 0x2e6   :  { %v769_v25 = vmax.f32 %v766_v15, 0.0 }
 0x2e8   :  { %1151 = vmatmul.mubr.f32.vlgmr.msra.gmra.mrb[4].mxu1 %v769_v25 }
 0x3bb   :  { %v859_v36 = vpop.f32.mrb[4].mxu1 }
 0x3bc   :  { %v860_v16 = vadd.f32 %v904_v5, %v859_v36  ;;  %v1152_v17 = vpop.f32.mrb[5].mxu1 }
 0x3be   :  { %863 = vst [vmem:[#allocation2] sm:$0xff] %v860_v16 }
 0x3bf   :  { %1287 = shalt.err (!%p1284_p4)
}
 0x3c0   :  { %s1288_s29 = scalar_lea.hbm %s1873_s10, 128 }
 0x3c1   :  { %p1289_p5 = scmp.ne.s32.totalorder %s1873_s10, %s1288_s29  ;;  %p1292_p6 = scmp.lt.u32.totalorder %s1288_s29, %s1873_s10 }
 0x3c3   :  { %p1294_p7 = pnand %p1292_p6, %p1289_p5 }
 0x3c5   :  { %1297 = shalt.err (!%p1294_p7)
}
 0x3c6   :  { %873 = dma.vmem_to_hbm [thread:$0]  %s871_s27, 128, %s1873_s10, [#allocation3]  }
 0x3c7   :  { %1298 = dma.done.wait [#allocation3], 128  }
 0x3c8   :  { %1299 = vsyncadd [#allocation3], 4294967168 }
 0x3c9   :  { %877 = vsyncpa [#allocation3], 1 }

</bundles_post_ra>
